<compile_context>
chip_gen: v7x
topology: tpu7x:2x2x1
jax: 0.10.0
libtpu: 0.0.40
codegen_flags: <defaults>
</compile_context>

<pallas_src>
import jax
import jax.numpy as jnp
import numpy as np
from jax.experimental import pallas as pl
from jax.experimental.pallas import tpu as pltpu


# ---------------------------------------------------------------------------
# Pallas kernel: one (sample, pixel-tile) block
# ---------------------------------------------------------------------------
def same_layer_residual_kernel(x_ref, xp_ref, w1a_ref, w1b_ref, wr2_ref,
                               b1_ref, bias_ref, out_ref):
    cout = out_ref.shape[1]

    x = x_ref[0]                                      # (Cin, TP), pixels on lanes
    xp = xp_ref[0]                                    # (Cp,  TP)

    # Fused MXU pass over x: rows [0:Cout) = bypass, rows [Cout:2Cout) = resid conv1 (BN1 scale folded).
    # Cast to the MXU operand dtype in-kernel (free VMEM->vreg cast; no HBM round trip).
    z = jnp.dot(w1a_ref[...], x.astype(w1a_ref.dtype),
                preferred_element_type=jnp.float32)   # (2*Cout, TP) f32

    # proj branch (BN scale folded into weight)
    p = jnp.dot(w1b_ref[...], xp.astype(w1b_ref.dtype),
                preferred_element_type=jnp.float32)   # (Cout, TP) f32

    y = z[:cout, :] + p                               # bypass + proj
    h = jnp.maximum(z[cout:, :] + b1_ref[...], 0.0)   # BN1 bias + ReLU, stays f32

    # resid conv2 (BN2 scale folded); wr2 kept f32 -- h is VMEM-resident, MXU has huge slack.
    r = jnp.dot(wr2_ref[...], h, preferred_element_type=jnp.float32)   # (Cout, TP)

    # merged post biases (b2 + bp + bc) + per-sample class term, broadcast over pixels
    y = y + r + bias_ref[0]

    # final activation (ReLU)
    out_ref[0] = jnp.maximum(y, 0.0).astype(out_ref.dtype)


# ---------------------------------------------------------------------------
# wrapper
# ---------------------------------------------------------------------------
def same_layer_residual(x_nchw, x_proj_nchw, x_class, packed, *, tile_p=None,
                        compute_dtype=jnp.float32, out_dtype=jnp.float32,
                        vmem_limit_bytes=None):
    N, Cin, H, W = x_nchw.shape
    _, Cp, _, _ = x_proj_nchw.shape
    Cout = packed["wr2"].shape[0]
    P = H * W

    in_b = jnp.dtype(x_nchw.dtype).itemsize
    out_b = jnp.dtype(out_dtype).itemsize

    # per-lane VMEM cost of one pipeline step:
    #   double-buffered input/output blocks + f32 scratch for z/p/h/r/y (~6*Cout lanes).
    per_lane = 2 * (Cin + Cp) * in_b + 2 * Cout * out_b + 6 * Cout * 4

    if tile_p is None:
        if P % 128 != 0:
            tile_p = P                      # full-extent block (allowed even if not lane-aligned)
        else:
            budget = 48 * 1024 * 1024       # fits v7x's 64 MiB physical VMEM with headroom
            max_tile = max(128, (budget // per_lane) // 128 * 128)
            tile_p = min(P, max_tile)
            while P % tile_p:
                tile_p -= 128
            # v7x shards 'parallel' grid axes over 2 TensorCores: keep >=2 grid steps.
            if N * (P // tile_p) < 2 and tile_p >= 256 and P % (tile_p // 2) == 0:
                tile_p //= 2
    assert P % tile_p == 0, "spatial size must be a multiple of tile_p"

    if vmem_limit_bytes is None:
        weight_bytes = 2 * (2 * Cout * Cin + Cout * Cp + Cout * Cout + 2 * Cout) * 4
        step_bytes = tile_p * per_lane + weight_bytes
        vmem_limit_bytes = min(64 << 20, max(32 << 20, int(1.5 * step_bytes)))

    # NCHW -> (N, C, P): pure metadata reshape, arrays stay in HBM untouched (no concat/cast).
    x3 = x_nchw.reshape(N, Cin, P)
    xp3 = x_proj_nchw.reshape(N, Cp, P)

    # Hoisted per-sample constant: class branch (1x1 conv + BN on a 1x1 "image") + merged
    # post-ReLU biases (b2 + bp + bc); broadcast over pixels inside the kernel.
    class_term = x_class.astype(jnp.float32) @ packed["wc"].T        # (N, Cout)
    bias = (packed["b_post"][None, :] + class_term)[:, :, None]      # (N, Cout, 1) f32
    b1 = packed["b1"][:, None].astype(jnp.float32)                   # (Cout, 1)   f32

    w1a = packed["w1a"].astype(compute_dtype)                        # (2*Cout, Cin)
    w1b = packed["w1b"].astype(compute_dtype)                        # (Cout, Cp)
    wr2 = packed["wr2"].astype(jnp.float32)                          # (Cout, Cout) always f32

    grid = (N, P // tile_p)

    out3 = pl.pallas_call(
        same_layer_residual_kernel,
        out_shape=jax.ShapeDtypeStruct((N, Cout, P), out_dtype),
        grid_spec=pltpu.PrefetchScalarGridSpec(
            num_scalar_prefetch=0,
            grid=grid,
            in_specs=[
                pl.BlockSpec((1, Cin, tile_p), lambda n, t: (n, 0, t)),   # x
                pl.BlockSpec((1, Cp, tile_p), lambda n, t: (n, 0, t)),    # x_proj
                pl.BlockSpec((2 * Cout, Cin), lambda n, t: (0, 0)),       # fused bypass|resid1 weight
                pl.BlockSpec((Cout, Cp), lambda n, t: (0, 0)),            # proj weight (BN folded)
                pl.BlockSpec((Cout, Cout), lambda n, t: (0, 0)),          # resid conv2 weight (f32)
                pl.BlockSpec((Cout, 1), lambda n, t: (0, 0)),             # pre-ReLU BN1 bias
                pl.BlockSpec((1, Cout, 1), lambda n, t: (n, 0, 0)),       # per-sample merged bias
            ],
            out_specs=pl.BlockSpec((1, Cout, tile_p), lambda n, t: (n, 0, t)),
        ),
        compiler_params=pltpu.CompilerParams(
            dimension_semantics=("parallel", "parallel"),
            vmem_limit_bytes=vmem_limit_bytes),
    )(x3, xp3, w1a, w1b, wr2, b1, bias)

    return out3.reshape(N, Cout, H, W)                               # pure reshape back to NCHW


# ---------------------------------------------------------------------------
# deterministic parameter construction (synthetic; no checkpoint loading)
# ---------------------------------------------------------------------------
def make_params(key, ch_in, ch_out, ch_proj_in, ch_proj_class):
    ks = jax.random.split(key, 9)
    f32 = jnp.float32

    def conv_w(k, co, ci):
        w = 0.2 * jax.random.normal(k, (co, ci), f32)
        sigma = jnp.linalg.svd(w, compute_uv=False)[0]           # exact spectral norm
        return w / sigma

    def bn_params(k, c, eps=1e-5):
        k1, k2, k3, k4 = jax.random.split(k, 4)
        gamma = 0.5 + jax.random.uniform(k1, (c,), f32)
        beta = 0.1 * jax.random.normal(k2, (c,), f32)
        mean = 0.1 * jax.random.normal(k3, (c,), f32)
        var = 0.5 + jax.random.uniform(k4, (c,), f32)
        scale = gamma / jnp.sqrt(var + eps)
        bias = beta - mean * scale
        return scale, bias

    raw = {
        "wb": conv_w(ks[0], ch_out, ch_in),              # bypass (spectral-normed)
        "wr1": conv_w(ks[1], ch_out, ch_in),             # resid conv1
        "wr2": conv_w(ks[2], ch_out, ch_out),            # resid conv2
        "wp": conv_w(ks[3], ch_out, ch_proj_in),         # proj (BasicLayer applies spectral_norm)
        "wc": conv_w(ks[4], ch_out, ch_proj_class),      # proj_class
    }
    raw["s1"], raw["b1"] = bn_params(ks[5], ch_out)      # resid BN1
    raw["s2"], raw["b2"] = bn_params(ks[6], ch_out)      # resid BN2
    raw["sp"], raw["bp"] = bn_params(ks[7], ch_out)      # proj BN
    raw["sc"], raw["bc"] = bn_params(ks[8], ch_out)      # proj_class BN
    return raw


def pack_params(raw):
    """Fold BN scales into weights; build [bypass ; resid1] fused weight and proj weight."""
    wr1s = raw["s1"][:, None] * raw["wr1"]
    wr2s = raw["s2"][:, None] * raw["wr2"]
    wps = raw["sp"][:, None] * raw["wp"]
    wcs = raw["sc"][:, None] * raw["wc"]

    w1a = jnp.concatenate([raw["wb"], wr1s], axis=0)     # (2*Cout, Cin)

    return {
        "w1a": w1a,
        "w1b": wps,                                      # (Cout, Cp)
        "wr2": wr2s,
        "wc": wcs,
        "b1": raw["b1"],
        "b_post": raw["b2"] + raw["bp"] + raw["bc"],
    }


# ---------------------------------------------------------------------------
# pure-JAX reference (NCHW, mirrors the PyTorch forward, uses RAW params)
# ---------------------------------------------------------------------------
def ref_forward(x, x_proj, x_class, raw):
    def conv1x1(inp, w):  # w: (Cout, Cin)
        return jnp.einsum("nchw,oc->nohw", inp, w)

    def bn(inp, s, b):
        return inp * s[None, :, None, None] + b[None, :, None, None]

    y = conv1x1(x, raw["wb"])                                               # bypass
    h = jnp.maximum(bn(conv1x1(x, raw["wr1"]), raw["s1"], raw["b1"]), 0.0)
    y = y + bn(conv1x1(h, raw["wr2"]), raw["s2"], raw["b2"])                # resid
    y = y + bn(conv1x1(x_proj, raw["wp"]), raw["sp"], raw["bp"])            # proj
    c = bn(conv1x1(x_class[:, :, None, None], raw["wc"]), raw["sc"], raw["bc"])
    y = y + c                                                               # proj_class (expand)
    return jnp.maximum(y, 0.0)


if __name__ == "__main__":
    N, C_IN, C_OUT, H, W = 2, 8, 16, 16, 16
    C_PROJ_IN, C_PROJ_CLASS = 4, 6

    key = jax.random.PRNGKey(0)
    k_x, k_xp, k_xc, k_p = jax.random.split(key, 4)

    x = jax.random.normal(k_x, (N, C_IN, H, W), jnp.float32)      # NCHW like PyTorch
    x_proj = jax.random.normal(k_xp, (N, C_PROJ_IN, H, W), jnp.float32)
    x_class = jax.random.normal(k_xc, (N, C_PROJ_CLASS), jnp.float32)

    raw = make_params(k_p, C_IN, C_OUT, C_PROJ_IN, C_PROJ_CLASS)
    packed = pack_params(raw)

    # f32 operands / f32 output for a tight correctness check. On v6e/v7x pass
    # compute_dtype=jnp.bfloat16 (MXU operands only; element-wise math stays f32) and/or
    # out_dtype=jnp.bfloat16 if the consumer tolerates it, to cut HBM traffic.
    out = same_layer_residual(x, x_proj, x_class, packed,
                              compute_dtype=jnp.float32, out_dtype=jnp.float32)
    out = jax.block_until_ready(out)

    ref = jax.block_until_ready(ref_forward(x, x_proj, x_class, raw))

    assert out.shape == (N, C_OUT, H, W), out.shape
    np.testing.assert_allclose(np.asarray(out), np.asarray(ref), rtol=1e-4, atol=1e-4)
    print("KERNEL_OK")
</pallas_src>

<mosaic_0001>
module attributes {stable_mosaic.version = 11 : i64} {
  func.func @same_layer_residual_kernel(%arg0: i32, %arg1: i32, %arg2: memref<1x8x256xf32, #tpu.memory_space<vmem>>, %arg3: memref<1x4x256xf32, #tpu.memory_space<vmem>>, %arg4: memref<32x8xf32, #tpu.memory_space<vmem>>, %arg5: memref<16x4xf32, #tpu.memory_space<vmem>>, %arg6: memref<16x16xf32, #tpu.memory_space<vmem>>, %arg7: memref<16x1xf32, #tpu.memory_space<vmem>>, %arg8: memref<1x16x1xf32, #tpu.memory_space<vmem>>, %arg9: memref<1x16x256xf32, #tpu.memory_space<vmem>>) attributes {dimension_semantics = [#tpu.dimension_semantics<parallel>, #tpu.dimension_semantics<parallel>], iteration_bounds = array<i64: 2, 1>, scalar_prefetch = 0 : i64, scratch_operands = 0 : i64, tpu.core_type = #tpu.core_type<tc>, window_params = [{transform_indices = @transform_0, window_bounds = array<i64: 1, 8, 256>}, {transform_indices = @transform_1, window_bounds = array<i64: 1, 4, 256>}, {pipeline_mode = #tpu.pipeline_mode<synchronous>, transform_indices = @transform_2, window_bounds = array<i64: 32, 8>}, {pipeline_mode = #tpu.pipeline_mode<synchronous>, transform_indices = @transform_3, window_bounds = array<i64: 16, 4>}, {pipeline_mode = #tpu.pipeline_mode<synchronous>, transform_indices = @transform_4, window_bounds = array<i64: 16, 16>}, {pipeline_mode = #tpu.pipeline_mode<synchronous>, transform_indices = @transform_5, window_bounds = array<i64: 16, 1>}, {transform_indices = @transform_6, window_bounds = array<i64: 1, 16, 1>}, {transform_indices = @transform_7, window_bounds = array<i64: 1, 16, 256>}]} {
    %c0 = arith.constant 0 : index
    %c0_0 = arith.constant 0 : index
    %c0_1 = arith.constant 0 : index
    %0 = vector.load %arg2[%c0, %c0_0, %c0_1] : memref<1x8x256xf32, #tpu.memory_space<vmem>>, vector<1x8x256xf32>
    %1 = vector.shape_cast %0 : vector<1x8x256xf32> to vector<8x256xf32>
    %c0_2 = arith.constant 0 : index
    %c0_3 = arith.constant 0 : index
    %c0_4 = arith.constant 0 : index
    %2 = vector.load %arg3[%c0_2, %c0_3, %c0_4] : memref<1x4x256xf32, #tpu.memory_space<vmem>>, vector<1x4x256xf32>
    %3 = vector.shape_cast %2 : vector<1x4x256xf32> to vector<4x256xf32>
    %c0_5 = arith.constant 0 : index
    %c0_6 = arith.constant 0 : index
    %4 = vector.load %arg4[%c0_5, %c0_6] : memref<32x8xf32, #tpu.memory_space<vmem>>, vector<32x8xf32>
    %cst = arith.constant dense<0.000000e+00> : vector<32x256xf32>
    %5 = tpu.matmul %4, %1, %cst {dimension_numbers = #tpu.dot_dimension_numbers<[1], [0], [0], [1], [0, 0, 1, 1], [], []>} : vector<32x8xf32>, vector<8x256xf32>, vector<32x256xf32> -> vector<32x256xf32>
    %c0_7 = arith.constant 0 : index
    %c0_8 = arith.constant 0 : index
    %6 = vector.load %arg5[%c0_7, %c0_8] : memref<16x4xf32, #tpu.memory_space<vmem>>, vector<16x4xf32>
    %cst_9 = arith.constant dense<0.000000e+00> : vector<16x256xf32>
    %7 = tpu.matmul %6, %3, %cst_9 {dimension_numbers = #tpu.dot_dimension_numbers<[1], [0], [0], [1], [0, 0, 1, 1], [], []>} : vector<16x4xf32>, vector<4x256xf32>, vector<16x256xf32> -> vector<16x256xf32>
    %8 = vector.extract_strided_slice %5 {offsets = [0, 0], sizes = [16, 256], strides = [1, 1]} : vector<32x256xf32> to vector<16x256xf32>
    %9 = arith.addf %8, %7 : vector<16x256xf32>
    %10 = vector.extract_strided_slice %5 {offsets = [16, 0], sizes = [16, 256], strides = [1, 1]} : vector<32x256xf32> to vector<16x256xf32>
    %c0_10 = arith.constant 0 : index
    %c0_11 = arith.constant 0 : index
    %11 = vector.load %arg7[%c0_10, %c0_11] : memref<16x1xf32, #tpu.memory_space<vmem>>, vector<16x1xf32>
    %12 = vector.broadcast %11 : vector<16x1xf32> to vector<16x256xf32>
    %13 = arith.addf %10, %12 : vector<16x256xf32>
    %cst_12 = arith.constant 0.000000e+00 : f32
    %14 = vector.broadcast %cst_12 : f32 to vector<16x256xf32>
    %15 = arith.maximumf %13, %14 : vector<16x256xf32>
    %c0_13 = arith.constant 0 : index
    %c0_14 = arith.constant 0 : index
    %16 = vector.load %arg6[%c0_13, %c0_14] : memref<16x16xf32, #tpu.memory_space<vmem>>, vector<16x16xf32>
    %cst_15 = arith.constant dense<0.000000e+00> : vector<16x256xf32>
    %17 = tpu.matmul %16, %15, %cst_15 {dimension_numbers = #tpu.dot_dimension_numbers<[1], [0], [0], [1], [0, 0, 1, 1], [], []>} : vector<16x16xf32>, vector<16x256xf32>, vector<16x256xf32> -> vector<16x256xf32>
    %18 = arith.addf %9, %17 : vector<16x256xf32>
    %c0_16 = arith.constant 0 : index
    %c0_17 = arith.constant 0 : index
    %c0_18 = arith.constant 0 : index
    %19 = vector.load %arg8[%c0_16, %c0_17, %c0_18] : memref<1x16x1xf32, #tpu.memory_space<vmem>>, vector<1x16x1xf32>
    %20 = vector.shape_cast %19 : vector<1x16x1xf32> to vector<16x1xf32>
    %21 = vector.broadcast %20 : vector<16x1xf32> to vector<16x256xf32>
    %22 = arith.addf %18, %21 : vector<16x256xf32>
    %cst_19 = arith.constant 0.000000e+00 : f32
    %23 = vector.broadcast %cst_19 : f32 to vector<16x256xf32>
    %24 = arith.maximumf %22, %23 : vector<16x256xf32>
    %c0_20 = arith.constant 0 : index
    %c0_21 = arith.constant 0 : index
    %c0_22 = arith.constant 0 : index
    %25 = vector.load %arg9[%c0_20, %c0_21, %c0_22] : memref<1x16x256xf32, #tpu.memory_space<vmem>>, vector<1x16x256xf32>
    %26 = vector.shape_cast %25 : vector<1x16x256xf32> to vector<16x256xf32>
    %27 = vector.shape_cast %24 : vector<16x256xf32> to vector<1x16x256xf32>
    tpu.vector_store %arg9[%c0_20, %c0_21, %c0_22], %27 {strides = array<i32>} : memref<1x16x256xf32, #tpu.memory_space<vmem>>, vector<1x16x256xf32>,
    return
  }
  func.func @transform_0(%arg0: i32, %arg1: i32) -> (i32, i32, i32) {
    %c0_i32 = arith.constant 0 : i32
    %c0_i32_0 = arith.constant 0 : i32
    return %arg0, %c0_i32, %arg1 : i32, i32, i32
  }
  func.func @transform_1(%arg0: i32, %arg1: i32) -> (i32, i32, i32) {
    %c0_i32 = arith.constant 0 : i32
    %c0_i32_0 = arith.constant 0 : i32
    return %arg0, %c0_i32, %arg1 : i32, i32, i32
  }
  func.func @transform_2(%arg0: i32, %arg1: i32) -> (i32, i32) {
    %c0_i32 = arith.constant 0 : i32
    %c0_i32_0 = arith.constant 0 : i32
    %c0_i32_1 = arith.constant 0 : i32
    return %c0_i32, %c0_i32_0 : i32, i32
  }
  func.func @transform_3(%arg0: i32, %arg1: i32) -> (i32, i32) {
    %c0_i32 = arith.constant 0 : i32
    %c0_i32_0 = arith.constant 0 : i32
    %c0_i32_1 = arith.constant 0 : i32
    return %c0_i32, %c0_i32_0 : i32, i32
  }
  func.func @transform_4(%arg0: i32, %arg1: i32) -> (i32, i32) {
    %c0_i32 = arith.constant 0 : i32
    %c0_i32_0 = arith.constant 0 : i32
    %c0_i32_1 = arith.constant 0 : i32
    return %c0_i32, %c0_i32_0 : i32, i32
  }
  func.func @transform_5(%arg0: i32, %arg1: i32) -> (i32, i32) {
    %c0_i32 = arith.constant 0 : i32
    %c0_i32_0 = arith.constant 0 : i32
    %c0_i32_1 = arith.constant 0 : i32
    return %c0_i32, %c0_i32_0 : i32, i32
  }
  func.func @transform_6(%arg0: i32, %arg1: i32) -> (i32, i32, i32) {
    %c0_i32 = arith.constant 0 : i32
    %c0_i32_0 = arith.constant 0 : i32
    %c0_i32_1 = arith.constant 0 : i32
    return %arg0, %c0_i32, %c0_i32_0 : i32, i32, i32
  }
  func.func @transform_7(%arg0: i32, %arg1: i32) -> (i32, i32, i32) {
    %c0_i32 = arith.constant 0 : i32
    %c0_i32_0 = arith.constant 0 : i32
    return %arg0, %c0_i32, %arg1 : i32, i32, i32
  }
}

</mosaic_0001>

<bundles_post_ra>
// kernel: tpu_custom_call.1
= control target key start
LH: loop header
LB: loop body
LE: loop exit
PB: predicated region body
PF: predicated region fallthrough
CT: control target
= control target key end

     0   :  { %12 = vsyncpa [#allocation3], 0  ;;  %s1226_s0 = inlined_call_operand.vmem [shape: f32[2,8,256], index: 0, kind: input, shape index: {}]   ;;  %s1227_s1 = inlined_call_operand.vmem [shape: f32[2,4,256], index: 1, kind: input, shape index: {}]   ;;  %s1228_s2 = inlined_call_operand.vmem [shape: f32[32,8], index: 2, kind: input, shape index: {}]   ;;  %s1229_s3 = inlined_call_operand.vmem [shape: f32[16,4], index: 3, kind: input, shape index: {}]   ;;  %s1230_s4 = inlined_call_operand.vmem [shape: f32[16,16], index: 4, kind: input, shape index: {}]   ;;  %s1231_s5 = inlined_call_operand.vmem [shape: f32[16,1], index: 5, kind: input, shape index: {}]   ;;  %s1232_s6 = inlined_call_operand.vmem [shape: f32[2,16,1], index: 6, kind: input, shape index: {}]   ;;  %s1233_s7 = inlined_call_operand.hbm [shape: f32[2,16,256], index: 7, kind: output, shape index: {}]  }
   0x1   :  { %14 = vsyncpa [#allocation3 + $0x1], 0  ;;  %s1059_s24 = smov 0   ;;  %s1061_s25 = smov 0  }
   0x2   :  { %s1063_s26 = smov 0   ;;  %s1065_s27 = smov 0  }
   0x3   :  { %s1067_s28 = smov 0   ;;  %s1069_s29 = smov 0  }
   0x4 LB: > { %s829_s30 = sadd.s32 4294967295, %s1012_s29   ;;  %s830_s8 = sadd.s32 4294967294, %s1012_s29   ;;  %s1012_s29 = sphi %s1069_s29, %s20_s29   ;;  %s1008_s28 = sphi %s1067_s28, %s1240_s28   ;;  %s1004_s27 = sphi %s1065_s27, %s1239_s27   ;;  %s1000_s26 = sphi %s1063_s26, %s1238_s26   ;;  %s996_s25 = sphi %s1061_s25, %s1237_s25   ;;  %s992_s24 = sphi %s1059_s24, %s1236_s24  }
   0x5   : > { %s32_s9 = sadd.s32 1, %s1008_s28  ;;  %s207_s10 = sadd.s32 1, %s1000_s26 }
   0x6   : > { %p34_p0 = scmp.ge.s32.totalorder %s32_s9, 2  ;;  %p217_p1 = scmp.ne.s32.totalorder %s1000_s26, %s996_s25 }
   0x7   : > { %p218_p2 = scmp.eq.s32.totalorder %s829_s30, 1  ;;  %p223_p3 = scmp.ne.s32.totalorder %s996_s25, %s992_s24 }
   0x8   : > { %s1242_s9 = smov (%p34_p0, %s32_s9), 0  ;;  %p224_p5 = scmp.eq.s32.totalorder %s830_s8, 1 }
   0x9   : > { %p1099_p4 = por %p218_p2, %p217_p1  ;;  %s202_s12 = ssub.s32 %s1008_s28, %s1242_s9 }
   0xa   : > { %p833_p6 = scmp.ge.s32.totalorder %s1012_s29, 1  ;;  %p205_p7 = scmp.eq.s32.totalorder %s202_s12, 0 }
   0xb   : > { %p1106_p8 = por %p224_p5, %p223_p3  ;;  %p288_p9 = scmp.lt.s32.totalorder %s1012_s29, 3 }
   0xc   : > { %s1112_s14 = scalar_select %p205_p7, %s1000_s26, %s207_s10  }
   0xd   : > { %p289_p10 = pnand %p833_p6, %p288_p9 }
   0xe   : > { %p339_p11 = scmp.lt.s32.totalorder (!%p289_p10), %s1004_s27, 1  ;;  %v1014_v0 = vmov (!%p289_p10), 0.0   ;;  %v570_v1 = vld [vmem:[%s1231_s5] sm:$0xff] (!%p289_p10)  ;;  %v1015_v2 = vmov (!%p289_p10), 0   ;;  %v571_v3 = vld [vmem:[%s1231_s5 + $0x8] sm:$0xff] (!%p289_p10)  ;;  %vm371_vm0 = vcmask (!%p289_p10), 64512  }
   0xf   : > { %292 = sbr.rel (%p289_p10) target bundleno = 502 (0x1f6), region = 48  ;;  %448 = vmatprep.mubr.f32.mxu1 (!%p289_p10), %v1014_v0  ;;  %553 = vmatprep.mubr.f32.mxu0 (!%p289_p10), %v1014_v0  ;;  %v367_v6 = vld [vmem:[%s1228_s2] sm:$0xff] (!%p289_p10)  ;;  %v368_v7 = vld [vmem:[%s1228_s2 + $0x8] sm:$0xff] (!%p289_p10)  ;;  %v369_v8 = vld [vmem:[%s1228_s2 + $0x10] sm:$0xff] (!%p289_p10)  ;;  %vm484_vm1 = vcmask (!%p289_p10), 1043456   ;;  %vm477_vm2 = vcmask (!%p289_p10), 31744  }
  0x10   : > { %931 = vset.pattern.permute.xlu0 (!%p289_p10), %v1015_v2  ;;  %932 = vset.pattern.permute.xlu1 (!%p289_p10), %v1015_v2  ;;  %v370_v9 = vld [vmem:[%s1228_s2 + $0x18] sm:$0xff] (!%p289_p10)  ;;  %v473_v12 = vld [vmem:[%s1229_s3] sm:$0xff] (!%p289_p10)  ;;  %v474_v13 = vld [vmem:[%s1229_s3 + $0x8] sm:$0xff] (!%p289_p10)  ;;  %vm592_vm3 = vcmask (!%p289_p10), 130048   ;;  %s859_s12 = sshll.u32 (!%p289_p10), %s1004_s27, 9 }
  0x11   : > { %574 = vperm.xlu0 (!%p289_p10), %931, %v570_v1   ;;  %v590_v36 = vld [vmem:[%s1230_s4] sm:$0xff] (!%p289_p10)  ;;  %v591_v37 = vld [vmem:[%s1230_s4 + $0x8] sm:$0xff] (!%p289_p10)  ;;  %s1178_s19 = scalar_lea.hbm (!%p289_p10), %s1233_s7, %s859_s12 }
  0x15   : > { %579 = vperm.xlu0 (!%p289_p10), %931, %v571_v3  }
  0x16   : > { %s1121_s17 = scalar_select %p339_p11, %s1004_s27, 1 }
  0x18   : > { %s856_s18 = sshll.u32 %s1121_s17, 4  ;;  %s857_s21 = sshll.u32 %s1121_s17, 3 }
  0x19   : > { %s346_s23 = scalar_lea.vmem %s1226_s0, %s856_s18  ;;  %s356_s30 = scalar_lea.vmem %s1227_s1, %s857_s21 }
  0x1a   : > { %v365_v4 = vld [vmem:[%s346_s23 + $0x8] sm:$0xff]  ;;  %v364_v5 = vld [vmem:[%s346_s23] sm:$0xff]  ;;  %s362_s20 = scalar_lea.vmem %s1232_s6, %s856_s18  ;;  %s335_s23 = sand.u32 1, %s996_s25  }
  0x1b   : > { %384 = vmatprep.subr.mxu1 %v365_v4  ;;  %v366_v10 = vld [vmem:[%s356_s30] sm:$0xff]  ;;  %v681_v15 = vld [vmem:[%s362_s20 + $0x8] sm:$0xff]  ;;  %s834_s30 = sshll.u32 %s335_s23, 5  ;;  %s1016_s17 = smov [#allocation2]  }
  0x1c   : > { %385 = vmatpush1.msra.mxu1 %v364_v5  ;;  %v476_v11 = vcombine.high %v366_v10, %v366_v10  ;;  %v680_v14 = vld [vmem:[%s362_s20] sm:$0xff]  ;;  %s337_s8 = scalar_lea.vmem [#allocation2], %s834_s30  ;;  %s1180_s20 = scalar_lea.sflag [#allocation3], %s335_s23 }
  0x1d   : > { %841 = vmatmul.mubr.msk.f32.vlgmr.msra.gmra.mrb[0].mxu1 %vm371_vm0, %v367_v6  ;;  %684 = vperm.xlu1 %932, %v680_v14   ;;  %s720_s10 = sshll.u32 %s337_s8, 4  ;;  %s938_s18 = sshll.u32 %s1016_s17, 4  ;;  %s1173_s10 = int_to_ptr.vmem [resolvable:$true] %s720_s10  ;;  %s939_s18 = int_to_ptr.vmem [resolvable:$false] %s938_s18 }
  0x1e   : > { %454 = vmatprep.mubr.f32.mxu1 %v1014_v0  ;;  %845 = vmatprep.subr.msk.mxu0 %vm484_vm1, %v476_v11  ;;  %s934_s27 = scalar_lea.vmem %s1173_s10, 512  ;;  %s940_s21 = scalar_lea.vmem %s939_s18, 1024 }
  0x1f   : > { %846 = vmatpush1.msk.msra.mxu0 %vm484_vm1, %v366_v10  ;;  %p935_p12 = scmp.ne.s32.totalorder %s1173_s10, %s934_s27  ;;  %p941_p1 = scmp.lt.s32.totalorder %s1173_s10, %s939_s18 }
  0x20   : > { %847 = vmatmul.mubr.msk.f32.vlgmr.msra.gmra.mrb[0].mxu0 %vm477_vm2, %v473_v12  ;;  %p942_p2 = scmp.lt.s32.totalorder %s940_s21, %s934_s27 }
  0x21   : > { %842 = vmatmul.mubr.msk.f32.gmra.mrb[2].mxu1 %vm371_vm0, %v368_v7  ;;  %559 = vmatprep.mubr.f32.mxu0 %v1014_v0  ;;  %p936_p13 = pnand %p935_p12, %p1099_p4 }
  0x22   : > { %460 = vmatprep.mubr.f32.mxu1 %v1014_v0  ;;  %689 = vperm.xlu1 %932, %v681_v15   ;;  %p943_p3 = por %p942_p2, %p941_p1 }
  0x23   : > { %p937_p0 = pneg %p936_p13 }
  0x24   : > { %848 = vmatmul.mubr.msk.f32.gmra.mrb[2].mxu0 %vm477_vm2, %v474_v13 }
  0x25   : > { %843 = vmatmul.mubr.msk.f32.gmra.mrb[4].mxu1 %vm371_vm0, %v369_v8  ;;  %663 = vmatprep.mubr.f32.mxu0 %v1014_v0  ;;  %p944_p5 = pnand %p943_p3, %p937_p0 }
  0x26   : > { %466 = vmatprep.mubr.f32.mxu1 %v1014_v0 }
  0x29   : > { %844 = vmatmul.mubr.msk.f32.gmra.mrb[6].mxu1 %vm371_vm0, %v370_v9 }
  0x90   : > { %v575_v20 = vpop.permute.xlu0 %574 }
  0x94   : > { %v580_v24 = vpop.permute.xlu0 %579 }
  0x9c   : > { %v685_v39 = vpop.permute.xlu1 %684 }
  0xa1   : > { %v690_v51 = vpop.permute.xlu1 %689 }
  0xf0   : > { %v450_v16 = vpop.f32.mrb[0].mxu1 }
  0xf1   : > { %v452_v17 = vpop.f32.mrb[1].mxu1 }
  0xf4   : > { %v456_v18 = vpop.f32.mrb[2].mxu1 }
  0xf5   : > { %v458_v19 = vpop.f32.mrb[3].mxu1 }
  0xf8   : > { %v462_v21 = vpop.f32.mrb[4].mxu1 }
  0xf9   : > { %v464_v22 = vpop.f32.mrb[5].mxu1  ;;  %v582_v23 = vadd.f32 %v575_v20, %v462_v21 }
  0xfa   : > { %v583_v25 = vadd.f32 %v575_v20, %v464_v22 }
  0xfb   : > { %v586_v30 = vmax.f32 %v582_v23, 0.0 }
  0xfc   : > { %v468_v26 = vpop.f32.mrb[6].mxu1  ;;  %v587_v32 = vmax.f32 %v583_v25, 0.0 }
  0xfd   : > { %v584_v27 = vadd.f32 %v580_v24, %v468_v26  ;;  %v470_v28 = vpop.f32.mrb[7].mxu1 }
  0xfe   : > { %v585_v29 = vadd.f32 %v580_v24, %v470_v28 }
  0xff   : > { %v588_v31 = vmax.f32 %v584_v27, 0.0 }
 0x100   : > { %v589_v33 = vmax.f32 %v585_v29, 0.0 }
 0x101   : > { %v862_v34 = vpack.c.bf16 %v588_v31, %v586_v30 }
 0x102   : > { %v860_v35 = vpack.c.bf16 %v589_v33, %v587_v32 }
 0x104   : > { %861 = vmatprep.subr.bf16.mxu0 %v860_v35 }
 0x105   : > { %863 = vmatpush1.bf16.msra.mxu0 %v862_v34 }
 0x108   : > { %849 = vmatmul.mubr.msk.f32.vlgmr.msra.gmra.mrb[0].mxu0 %vm592_vm3, %v590_v36 }
 0x109   : > { %669 = vmatprep.mubr.f32.mxu0 %v1014_v0 }
 0x10c   : > { %850 = vmatmul.mubr.msk.f32.gmra.mrb[2].mxu0 %vm592_vm3, %v591_v37 }
 0x1db   : > { %v665_v38 = vpop.f32.mrb[0].mxu0 }
 0x1dc   : > { %v864_v40 = vadd.f32 %v665_v38, %v450_v16  ;;  %v667_v41 = vpop.f32.mrb[1].mxu0 }
 0x1dd   : > { %v865_v42 = vadd.f32 %v667_v41, %v452_v17 }
 0x1de   : > { %v692_v43 = vadd.f32 %v864_v40, %v685_v39 }
 0x1df   : > { %v693_v44 = vadd.f32 %v865_v42, %v685_v39  ;;  %v671_v45 = vpop.f32.mrb[2].mxu0 }
 0x1e0   : > { %v696_v46 = vmax.f32 %v692_v43, 0.0  ;;  %v866_v47 = vadd.f32 %v671_v45, %v456_v18  ;;  %v673_v48 = vpop.f32.mrb[3].mxu0 }
 0x1e1   : > { %v697_v49 = vmax.f32 %v693_v44, 0.0  ;;  %v867_v50 = vadd.f32 %v673_v48, %v458_v19 }
 0x1e2   : > { %700 = vst [vmem:[%s337_s8] sm:$0xff] %v696_v46  ;;  %v694_v52 = vadd.f32 %v866_v47, %v690_v51 }
 0x1e3   : > { %701 = vst [vmem:[%s337_s8 + $0x8] sm:$0xff] %v697_v49  ;;  %v695_v53 = vadd.f32 %v867_v50, %v690_v51 }
 0x1e4   : > { %v698_v54 = vmax.f32 %v694_v52, 0.0 }
 0x1e5   : > { %v699_v55 = vmax.f32 %v695_v53, 0.0 }
 0x1e6   : > { %702 = vst [vmem:[%s337_s8 + $0x10] sm:$0xff] %v698_v54 }
 0x1e7   : > { %703 = vst [vmem:[%s337_s8 + $0x18] sm:$0xff] %v699_v55 }
 0x1e8   : > { %947 = shalt.err (!%p944_p5)
}
 0x1e9   : > { %s948_s22 = scalar_lea.hbm %s1178_s19, 512  ;;  %s952_s8 = scalar_lea.hbm %s1233_s7, 1024 }
 0x1ea   : > { %p949_p6 = scmp.ne.s32.totalorder %s1178_s19, %s948_s22  ;;  %p953_p10 = scmp.lt.u32.totalorder %s1178_s19, %s1233_s7 }
 0x1eb   : > { %p954_p11 = scmp.lt.u32.totalorder %s952_s8, %s948_s22  ;;  %p956_p13 = scmp.lt.u32.totalorder %s948_s22, %s1178_s19 }
 0x1ec   : > { %p950_p7 = pnand %p949_p6, %p1099_p4 }
 0x1ed   : > { %p955_p12 = por %p954_p11, %p953_p10 }
 0x1ee   : > { %p951_p9 = pneg %p950_p7 }
 0x1ef   : > { %p957_p0 = por %p956_p13, %p955_p12 }
 0x1f1   : > { %p958_p1 = pnand %p957_p0, %p951_p9 }
 0x1f3   : > { %961 = shalt.err (!%p958_p1)
}
 0x1f4   : > { %s1017_s16 = smov 256   ;;  %s1018_s27 = smov 16  }
 0x1f5   : > { %872 = dma.vmem_to_hbm [thread:$0]  (%p1099_p4), %s1173_s10, 512, %s1178_s19, %s1180_s20, %s1017_s16, %s1017_s16, %s1018_s27  }
 0x1f6 PF: > { %p878_p2 = scmp.ge.s32.totalorder %s1012_s29, 2  ;;  %s735_s17 = sand.u32 1, %s992_s24  }
 0x1f7   : > { %s736_s18 = scalar_lea.sflag [#allocation3], %s735_s17 }
 0x1f8   : > { %p875_p3 = pnand %p878_p2, %p1106_p8 }
 0x1fa   : > { %987 = dma.done.wait (!%p875_p3), %s736_s18, 512  }
 0x1fb   : > { %989 = vsyncadd (!%p875_p3), %s736_s18, 4294966784  ;;  %s20_s29 = sadd.s32 1, %s1012_s29   ;;  %s1236_s24 = smov %s996_s25 }
 0x1fc   : > { %p17_p5 = scmp.ge.s32.totalorder %s20_s29, 4   ;;  %s1237_s25 = smov %s1000_s26 }
 0x1fd   : > { %s1238_s26 = smov %s1112_s14  ;;  %s1239_s27 = smov %s1008_s28 }
 0x1fe   : > { %s1240_s28 = smov %s1242_s9  ;;  %19 = sbr.rel (!%p17_p5) target bundleno = 4 (0x4), region = 89 }
 0x205   :  { %741 = vsyncpa [#allocation3], 1 }
 0x206   :  { %743 = vsyncpa [#allocation3 + $0x1], 1 }

</bundles_post_ra>
